<compile_context>
chip_gen: v7x
topology: tpu7x:2x2x1
jax: 0.10.0
libtpu: 0.0.40
codegen_flags: <defaults>
</compile_context>

<pallas_src>
import jax
import jax.numpy as jnp
from jax import lax
from jax.experimental import pallas as pl
from jax.experimental.pallas import tpu as pltpu

LANES = 128
BLOCK_ROWS = 8192          # (8192,128) f32 = 4 MiB per input per grid step
CHUNK_ROWS = 512           # fori sub-chunk: bounds live vregs in the reduce
VMEM_LIMIT_BYTES = 32 * 1024 * 1024


def _num_tensorcores():
    """2 TensorCores per chip only on v7x; default 1 (always correct)."""
    try:
        kind = jax.devices()[0].device_kind.lower()
    except Exception:
        return 1
    if "v7" in kind or "tpu7" in kind:
        return 2
    return 1


def _small_kernel(a_ref, b_ref, o_ref):
    # Whole slab fits in one block: single-step squared-diff + per-lane reduce.
    d = a_ref[...].astype(jnp.float32) - b_ref[...].astype(jnp.float32)
    o_ref[...] = jnp.sum(d * d, axis=0, keepdims=True)


def _make_large_kernel(rows, block_rows, chunk_rows, blocks_per_core,
                       needs_mask, num_cores):
    n_chunks = block_rows // chunk_rows

    def _partial_sum(a_ref, b_ref, masked, rows_left):
        # Fold the (block_rows,128) block into (8,128) per-lane partials in
        # chunk_rows pieces so the squared-diff intermediate never exceeds
        # ~64 live vregs per operand (pure VPU adds, no XLU reduce).
        def body(j, carry):
            start = pl.multiple_of(j * chunk_rows, chunk_rows)
            a = a_ref[pl.ds(start, chunk_rows), :].astype(jnp.float32)
            b = b_ref[pl.ds(start, chunk_rows), :].astype(jnp.float32)
            d = a - b
            sq = d * d
            if masked:
                ridx = lax.broadcasted_iota(jnp.int32, (chunk_rows, LANES), 0)
                sq = jnp.where(ridx + start < rows_left, sq, 0.0)
            return carry + jnp.sum(
                sq.reshape(chunk_rows // 8, 8, LANES), axis=0)

        return lax.fori_loop(0, n_chunks, body,
                             jnp.zeros((8, LANES), jnp.float32))

    def kernel(a_ref, b_ref, o_ref):
        if num_cores > 1:
            c = pl.program_id(0)   # core split (core_parallel, v7x only)
            i = pl.program_id(1)   # block reduction (arbitrary)
        else:
            c = 0
            i = pl.program_id(0)   # block reduction (arbitrary)

        @pl.when(i == 0)
        def _():
            o_ref[...] = jnp.zeros_like(o_ref)

        if needs_mask:
            # Only the ragged last block (and a clamped overhang re-read on the
            # 2-core split) pays the mask; full blocks take the fast branch.
            g = c * blocks_per_core + i            # unclamped global block id
            rows_left = rows - g * block_rows      # may be <= 0

            @pl.when(rows_left >= block_rows)
            def _():
                o_ref[...] += _partial_sum(a_ref, b_ref, False, None)

            @pl.when(rows_left < block_rows)
            def _():
                o_ref[...] += _partial_sum(a_ref, b_ref, True, rows_left)
        else:
            o_ref[...] += _partial_sum(a_ref, b_ref, False, None)

    return kernel


def _sum_sq_diff_2d(a2d, b2d):
    """Sum of squared differences over a (rows, 128) slab via Pallas."""
    rows = a2d.shape[0]

    if rows <= BLOCK_ROWS:
        # One block covering the whole slab (block shape == full array dims).
        partials = pl.pallas_call(
            _small_kernel,
            out_shape=jax.ShapeDtypeStruct((1, LANES), jnp.float32),
            grid_spec=pltpu.PrefetchScalarGridSpec(
                num_scalar_prefetch=0,
                grid=(1,),
                in_specs=[
                    pl.BlockSpec((rows, LANES), lambda i: (0, 0)),
                    pl.BlockSpec((rows, LANES), lambda i: (0, 0)),
                ],
                out_specs=pl.BlockSpec((1, LANES), lambda i: (0, 0)),
            ),
            compiler_params=pltpu.CompilerParams(
                dimension_semantics=(pltpu.ARBITRARY,),
                vmem_limit_bytes=VMEM_LIMIT_BYTES),
        )(a2d, b2d)
        return jnp.sum(partials)

    num_cores = _num_tensorcores()
    num_blocks = -(-rows // BLOCK_ROWS)              # ceil div (Python int)

    if num_cores > 1 and num_blocks > 1:
        blocks_per_core = -(-num_blocks // num_cores)
        needs_mask = (rows % BLOCK_ROWS != 0) or (num_blocks % num_cores != 0)
        grid = (num_cores, blocks_per_core)

        def in_map(c, i):
            g = c * blocks_per_core + i
            # Clamp so the overhang step of the last core re-reads a valid
            # block; its contribution is zeroed by the in-kernel mask.
            return (jnp.minimum(g, num_blocks - 1), 0)

        out_map = lambda c, i: (c, 0)
        out_rows = num_cores * 8
        dims = (pltpu.CORE_PARALLEL, pltpu.ARBITRARY)
    else:
        num_cores = 1
        blocks_per_core = num_blocks
        needs_mask = (rows % BLOCK_ROWS != 0)
        grid = (num_blocks,)
        in_map = lambda i: (i, 0)
        out_map = lambda i: (0, 0)
        out_rows = 8
        dims = (pltpu.ARBITRARY,)

    kernel = _make_large_kernel(rows, BLOCK_ROWS, CHUNK_ROWS,
                                blocks_per_core, needs_mask, num_cores)

    partials = pl.pallas_call(
        kernel,
        out_shape=jax.ShapeDtypeStruct((out_rows, LANES), jnp.float32),
        grid_spec=pltpu.PrefetchScalarGridSpec(
            num_scalar_prefetch=0,
            grid=grid,
            in_specs=[
                pl.BlockSpec((BLOCK_ROWS, LANES), in_map),
                pl.BlockSpec((BLOCK_ROWS, LANES), in_map),
            ],
            out_specs=pl.BlockSpec((8, LANES), out_map),
        ),
        compiler_params=pltpu.CompilerParams(
            dimension_semantics=dims,
            vmem_limit_bytes=VMEM_LIMIT_BYTES),
    )(a2d, b2d)
    return jnp.sum(partials)


def mse_loss(img1, img2, alpha=0.9):
    """alpha * mean((img1 - img2)^2), same semantics as the PyTorch MSEloss."""
    assert img1.shape == img2.shape, "MSELoss expects matching shapes"
    # Stream inputs in their native dtype (bf16 stays bf16 in HBM); the
    # upcast to f32 happens inside the kernel in VMEM.
    flat_a = img1.reshape(-1)
    flat_b = img2.reshape(-1)
    n = flat_a.shape[0]
    n_main = (n // LANES) * LANES
    rows = n_main // LANES

    sq_sum = jnp.float32(0.0)
    if rows > 0:
        if n_main == n:
            a2d = flat_a.reshape(rows, LANES)        # zero-copy reshape
            b2d = flat_b.reshape(rows, LANES)
        else:
            a2d = flat_a[:n_main].reshape(rows, LANES)
            b2d = flat_b[:n_main].reshape(rows, LANES)
        sq_sum = sq_sum + _sum_sq_diff_2d(a2d, b2d)
    if n_main != n:
        # Sub-128-element tail: plain JAX, negligible traffic.
        ta = flat_a[n_main:].astype(jnp.float32)
        tb = flat_b[n_main:].astype(jnp.float32)
        sq_sum = sq_sum + jnp.sum((ta - tb) ** 2)

    mse = sq_sum / jnp.float32(n)
    return (jnp.float32(alpha) * mse).astype(jnp.float32)


if __name__ == "__main__":
    key = jax.random.PRNGKey(0)
    ks = jax.random.split(key, 10)

    loss_fn = jax.jit(mse_loss, static_argnames=("alpha",))

    def check(a, b, alpha, rtol=1e-4, atol=1e-6):
        out = loss_fn(a, b, alpha=alpha)
        jax.block_until_ready(out)
        ref = jnp.float32(alpha) * jnp.mean(
            (a.astype(jnp.float32) - b.astype(jnp.float32)) ** 2)
        assert jnp.allclose(out, ref, rtol=rtol, atol=atol), (out, ref)

    # Primary small NCHW case (typical EDSR image tensors at small size).
    check(jax.random.normal(ks[0], (2, 4, 16, 16), jnp.float32),
          jax.random.normal(ks[1], (2, 4, 16, 16), jnp.float32), 0.9)

    # Large path, exact multiple of the block: mask-free steady state.
    check(jax.random.normal(ks[2], (4, 4, 256, 512), jnp.float32),
          jax.random.normal(ks[3], (4, 4, 256, 512), jnp.float32), 0.9)

    # Large path with a ragged last block: masked branch under pl.when.
    check(jax.random.normal(ks[4], (4, 3, 256, 512), jnp.float32),
          jax.random.normal(ks[5], (4, 3, 256, 512), jnp.float32), 0.9)

    # Odd size: exercises the sub-128-element tail path in the wrapper.
    check(jax.random.normal(ks[6], (2, 3, 7, 5), jnp.float32),
          jax.random.normal(ks[7], (2, 3, 7, 5), jnp.float32), 0.5)

    # bf16 inputs streamed un-upcast (half the HBM bytes), f32 accumulation.
    check(jax.random.normal(ks[8], (2, 4, 32, 32), dtype=jnp.bfloat16),
          jax.random.normal(ks[9], (2, 4, 32, 32), dtype=jnp.bfloat16), 0.9,
          rtol=1e-3, atol=1e-5)

    print("KERNEL_OK")
</pallas_src>

<mosaic_0001>
module attributes {stable_mosaic.version = 11 : i64} {
  func.func @_small_kernel(%arg0: i32, %arg1: memref<16x128xf32, #tpu.memory_space<vmem>>, %arg2: memref<16x128xf32, #tpu.memory_space<vmem>>, %arg3: memref<1x128xf32, #tpu.memory_space<vmem>>) attributes {dimension_semantics = [#tpu.dimension_semantics<arbitrary>], iteration_bounds = array<i64: 1>, scalar_prefetch = 0 : i64, scratch_operands = 0 : i64, tpu.core_type = #tpu.core_type<tc>, window_params = [{pipeline_mode = #tpu.pipeline_mode<synchronous>, transform_indices = @transform_0, window_bounds = array<i64: 16, 128>}, {pipeline_mode = #tpu.pipeline_mode<synchronous>, transform_indices = @transform_1, window_bounds = array<i64: 16, 128>}, {pipeline_mode = #tpu.pipeline_mode<synchronous>, transform_indices = @transform_2, window_bounds = array<i64: 1, 128>}]} {
    %c0 = arith.constant 0 : index
    %c0_0 = arith.constant 0 : index
    %0 = vector.load %arg1[%c0, %c0_0] : memref<16x128xf32, #tpu.memory_space<vmem>>, vector<16x128xf32>
    %c0_1 = arith.constant 0 : index
    %c0_2 = arith.constant 0 : index
    %1 = vector.load %arg2[%c0_1, %c0_2] : memref<16x128xf32, #tpu.memory_space<vmem>>, vector<16x128xf32>
    %2 = arith.subf %0, %1 : vector<16x128xf32>
    %3 = arith.mulf %2, %2 : vector<16x128xf32>
    %cst = arith.constant dense<0.000000e+00> : vector<128xf32>
    %4 = vector.multi_reduction <add>, %3, %cst [0] : vector<16x128xf32> to vector<128xf32>
    %5 = vector.shape_cast %4 : vector<128xf32> to vector<1x128xf32>
    %c0_3 = arith.constant 0 : index
    %c0_4 = arith.constant 0 : index
    %6 = vector.load %arg3[%c0_3, %c0_4] : memref<1x128xf32, #tpu.memory_space<vmem>>, vector<1x128xf32>
    tpu.vector_store %arg3[%c0_3, %c0_4], %5 {strides = array<i32>} : memref<1x128xf32, #tpu.memory_space<vmem>>, vector<1x128xf32>,
    return
  }
  func.func @transform_0(%arg0: i32) -> (i32, i32) {
    %c0_i32 = arith.constant 0 : i32
    %c0_i32_0 = arith.constant 0 : i32
    %c0_i32_1 = arith.constant 0 : i32
    return %c0_i32, %c0_i32_0 : i32, i32
  }
  func.func @transform_1(%arg0: i32) -> (i32, i32) {
    %c0_i32 = arith.constant 0 : i32
    %c0_i32_0 = arith.constant 0 : i32
    %c0_i32_1 = arith.constant 0 : i32
    return %c0_i32, %c0_i32_0 : i32, i32
  }
  func.func @transform_2(%arg0: i32) -> (i32, i32) {
    %c0_i32 = arith.constant 0 : i32
    %c0_i32_0 = arith.constant 0 : i32
    %c0_i32_1 = arith.constant 0 : i32
    return %c0_i32, %c0_i32_0 : i32, i32
  }
}

</mosaic_0001>

<bundles_post_ra>
// kernel: mse_loss.1
= control target key start
LH: loop header
LB: loop body
LE: loop exit
PB: predicated region body
PF: predicated region fallthrough
CT: control target
= control target key end

     0   :  { %s61_s0 = inlined_call_operand.vmem [shape: f32[16,128], index: 0, kind: input, shape index: {}]   ;;  %s62_s1 = inlined_call_operand.vmem [shape: f32[16,128], index: 1, kind: input, shape index: {}]   ;;  %s63_s2 = inlined_call_operand.vmem [shape: f32[1,128], index: 2, kind: output, shape index: {}]  }
   0x1   :  { %v11_v0 = vld [vmem:[%s61_s0] sm:$0xff]  ;;  %v12_v1 = vld [vmem:[%s61_s0 + $0x8] sm:$0xff] }
   0x2   :  { %v13_v2 = vld [vmem:[%s62_s1] sm:$0xff]  ;;  %v14_v3 = vld [vmem:[%s62_s1 + $0x8] sm:$0xff] }
   0x3   :  { %v15_v4 = vsub.f32 %v11_v0, %v13_v2  ;;  %v16_v5 = vsub.f32 %v12_v1, %v14_v3 }
   0x5   :  { %v17_v6 = vmul.f32 %v15_v4, %v15_v4  ;;  %v18_v7 = vmul.f32 %v16_v5, %v16_v5 }
   0x7   :  { %v19_v8 = vadd.f32 %v18_v7, %v17_v6 }
   0x9   :  { %v20_v9 = vrot.slane %v19_v8, 4 }
   0xb   :  { %v21_v10 = vadd.f32 %v20_v9, %v19_v8 }
   0xd   :  { %v22_v11 = vrot.slane %v21_v10, 2 }
   0xf   :  { %v23_v12 = vadd.f32 %v22_v11, %v21_v10 }
  0x11   :  { %v24_v13 = vrot.slane %v23_v12, 1 }
  0x13   :  { %v25_v14 = vadd.f32 %v24_v13, %v23_v12 }
  0x15   :  { %26 = vst [vmem:[%s63_s2] sm:$0x1] %v25_v14 }

</bundles_post_ra>
